<compile_context>
chip_gen: v7x
topology: tpu7x:2x2x1
jax: 0.10.0
libtpu: 0.0.40
codegen_flags: <defaults>
</compile_context>

<pallas_src>
import jax
import jax.numpy as jnp
from jax import lax
from jax.experimental import pallas as pl
from jax.experimental.pallas import tpu as pltpu

_LANES = 128
_SUBLANES = 8


def _round_up(x, m):
    return ((x + m - 1) // m) * m


def _vmem_plan(n, c_in, length, c_out, l_out_p, kc, x_bytes, op_bytes, out_bytes,
               *, max_tb=8, min_steps=4, batch_tile=None):
    """Pick the batch tile TB and the scoped-VMEM limit (generation-aware)."""
    try:
        cap = int(pltpu.get_tpu_info().vmem_capacity_bytes)  # 128 MiB v5e/v6e, 64 MiB v7x
    except Exception:
        cap = 64 * 1024 * 1024
    vmem_limit = min(cap // 2, 64 * 1024 * 1024)

    def residency(tb):
        return (2 * tb * c_in * length * x_bytes             # double-buffered input block
                + 2 * tb * c_out * l_out_p * out_bytes       # double-buffered output block
                + kc * tb * l_out_p * op_bytes                # stacked-operand scratch
                + 2 * (c_out * kc * op_bytes + c_out * 4))    # weight + bias blocks

    if batch_tile is not None:
        return batch_tile, vmem_limit

    tb = 1
    for d in range(1, min(max_tb, n) + 1):
        if n % d != 0:
            continue
        if n // d >= min_steps and residency(d) <= int(0.8 * vmem_limit):
            tb = d
    return tb, vmem_limit


def out_conv(x, weight, bias, *, mxu_dtype=None, batch_tile=None):
    """nn.Conv1d(C_in, C_out, K, stride=1, padding=(K-1)//2, bias=True).forward(x).

    x: (N, C_in, L); weight: (C_out, C_in, K); bias: (C_out,).
    Returns (N, C_out, L_out), L_out = L + 2*((K-1)//2) - K + 1
    (== L for odd K, L-1 for even K, matching the PyTorch module).
    """
    n, c_in, length = x.shape
    c_out, c_in_w, k = weight.shape
    assert c_in_w == c_in, (c_in_w, c_in)

    pad = (k - 1) // 2
    l_out = length + 2 * pad - k + 1
    assert l_out >= 1

    l_out_p = _round_up(l_out, _LANES)          # lane-dense output length
    c_in_p = _round_up(c_in, _SUBLANES)         # sublane-aligned tap blocks
    kc = k * c_in_p                             # contraction length

    op_dtype = jnp.dtype(mxu_dtype) if mxu_dtype is not None else jnp.dtype(x.dtype)
    out_dtype = jnp.dtype(x.dtype)

    tb, vmem_limit = _vmem_plan(
        n, c_in, length, c_out, l_out_p, kc,
        jnp.dtype(x.dtype).itemsize, op_dtype.itemsize, out_dtype.itemsize,
        batch_tile=batch_tile)
    assert n % tb == 0
    gb = n // tb

    # Flattened weight: column index = t*c_in_p + ci (zeros for ci >= c_in), in
    # lock-step with the sublane stacking of the shifted input views below.
    wt = jnp.transpose(weight, (0, 2, 1))                     # (C_out, K, C_in)
    if c_in_p > c_in:
        wt = jnp.pad(wt, ((0, 0), (0, 0), (0, c_in_p - c_in)))
    w_flat = wt.reshape(c_out, kc).astype(op_dtype)
    b2d = bias.reshape(c_out, 1).astype(jnp.float32)

    # Static shift geometry per tap: output lane l takes x[:, l + t - pad].
    tap_geom = []
    for t in range(k):
        dst = max(0, pad - t)
        src = max(0, t - pad)
        ln = min(l_out, length + pad - t) - dst
        tap_geom.append((dst, src, ln))

    def kernel(x_ref, w_ref, b_ref, o_ref, xs_ref):
        # x_ref:  (TB, C_in, L)         raw input rows for this batch tile
        # w_ref:  (C_out, Kc)           flattened, channel-padded weight
        # b_ref:  (C_out, 1)            f32 bias column
        # o_ref:  (TB, C_out, L_out_p)  lane-dense output tile
        # xs_ref: (Kc, TB*L_out_p)      stacked MXU operand (VMEM scratch)
        #
        # Build the stacked operand: for tap t and batch bi, rows
        # [t*c_in_p, (t+1)*c_in_p) x lanes [bi*L_out_p, (bi+1)*L_out_p) hold the
        # zero-padded, t-shifted signal.  Each sub-block is assembled in-register
        # and stored once (aligned full block -> no memset pass, no double store).
        for bi in range(tb):                 # static unroll; TB <= 8 and every
            xb = x_ref[bi]                   # iteration's values die at its store
            if xb.dtype != op_dtype:
                xb = xb.astype(op_dtype)     # one cast per batch element (not K x)
            for t, (dst, src, ln) in enumerate(tap_geom):
                pieces = []
                if dst > 0:
                    pieces.append(jnp.zeros((c_in, dst), op_dtype))
                pieces.append(xb[:, src:src + ln])
                if l_out_p - dst - ln > 0:
                    pieces.append(jnp.zeros((c_in, l_out_p - dst - ln), op_dtype))
                blk = pieces[0] if len(pieces) == 1 else jnp.concatenate(pieces, axis=1)
                if c_in_p > c_in:
                    blk = jnp.concatenate(
                        [blk, jnp.zeros((c_in_p - c_in, l_out_p), op_dtype)], axis=0)
                xs_ref[pl.ds(t * c_in_p, c_in_p), pl.ds(bi * l_out_p, l_out_p)] = blk

        # One MXU matmul for the whole batch tile (f32 accumulation) and a single
        # bias broadcast+add.
        acc = jnp.dot(w_ref[...], xs_ref[...],
                      preferred_element_type=jnp.float32) + b_ref[...]
        for bi in range(tb):                 # lane-aligned full-width stores
            o_ref[bi] = acc[:, bi * l_out_p:(bi + 1) * l_out_p].astype(o_ref.dtype)

    x_bytes = jnp.dtype(x.dtype).itemsize
    cost = pl.CostEstimate(
        flops=2 * n * c_out * kc * l_out_p,
        transcendentals=0,
        bytes_accessed=(n * c_in * length * x_bytes
                        + c_out * kc * op_dtype.itemsize
                        + c_out * 4
                        + n * c_out * l_out_p * out_dtype.itemsize))

    out_padded = pl.pallas_call(
        kernel,
        out_shape=jax.ShapeDtypeStruct((n, c_out, l_out_p), out_dtype),
        grid_spec=pltpu.PrefetchScalarGridSpec(
            num_scalar_prefetch=0,
            grid=(gb,),
            in_specs=[
                pl.BlockSpec((tb, c_in, length), lambda g: (g, 0, 0)),
                pl.BlockSpec((c_out, kc), lambda g: (0, 0)),
                pl.BlockSpec((c_out, 1), lambda g: (0, 0)),
            ],
            out_specs=pl.BlockSpec((tb, c_out, l_out_p), lambda g: (g, 0, 0)),
            scratch_shapes=[pltpu.VMEM((kc, tb * l_out_p), op_dtype)],
        ),
        # TODO(synk): if a v7x profile shows one idle TensorCore, switch this axis
        # to pltpu.CORE_PARALLEL.
        compiler_params=pltpu.CompilerParams(
            dimension_semantics=("parallel",),
            vmem_limit_bytes=vmem_limit,
        ),
        cost_estimate=cost,
    )(x, w_flat, b2d)

    if l_out_p == l_out:
        return out_padded              # already the exact shape: no extra HBM pass
    return out_padded[..., :l_out]     # drop lane-padding columns


if __name__ == "__main__":
    # Small shapes consistent with OutConv(in_channels, out_channels, kernel_size).
    N, C_IN, C_OUT, L, KS = 2, 4, 3, 16, 3

    key = jax.random.PRNGKey(0)
    kx, kw, kb = jax.random.split(key, 3)
    x = jax.random.normal(kx, (N, C_IN, L), dtype=jnp.float32)
    weight = jax.random.normal(kw, (C_OUT, C_IN, KS), dtype=jnp.float32) * 0.1
    bias = jax.random.normal(kb, (C_OUT,), dtype=jnp.float32) * 0.1

    out = jax.block_until_ready(out_conv(x, weight, bias))

    # Reference: same semantics as torch.nn.Conv1d(padding=(K-1)//2, bias=True).
    ref = lax.conv_general_dilated(
        x, weight,
        window_strides=(1,),
        padding=[((KS - 1) // 2, (KS - 1) // 2)],
        dimension_numbers=("NCH", "OIH", "NCH"),
    ) + bias.reshape(1, C_OUT, 1)

    assert out.shape == ref.shape, (out.shape, ref.shape)
    max_err = float(jnp.max(jnp.abs(out - ref)))
    assert max_err < 1e-4, max_err
    print("KERNEL_OK")
</pallas_src>

<mosaic_0001>
module attributes {stable_mosaic.version = 11 : i64} {
  func.func @kernel(%arg0: i32, %arg1: memref<1x4x16xf32, #tpu.memory_space<vmem>>, %arg2: memref<3x24xf32, #tpu.memory_space<vmem>>, %arg3: memref<3x1xf32, #tpu.memory_space<vmem>>, %arg4: memref<1x3x128xf32, #tpu.memory_space<vmem>>, %arg5: memref<24x128xf32, #tpu.memory_space<vmem>>) attributes {dimension_semantics = [#tpu.dimension_semantics<parallel>], iteration_bounds = array<i64: 2>, scalar_prefetch = 0 : i64, scratch_operands = 1 : i64, tpu.core_type = #tpu.core_type<tc>, window_params = [{transform_indices = @transform_0, window_bounds = array<i64: 1, 4, 16>}, {pipeline_mode = #tpu.pipeline_mode<synchronous>, transform_indices = @transform_1, window_bounds = array<i64: 3, 24>}, {pipeline_mode = #tpu.pipeline_mode<synchronous>, transform_indices = @transform_2, window_bounds = array<i64: 3, 1>}, {transform_indices = @transform_3, window_bounds = array<i64: 1, 3, 128>}]} {
    %c0 = arith.constant 0 : index
    %c0_0 = arith.constant 0 : index
    %c0_1 = arith.constant 0 : index
    %0 = vector.load %arg1[%c0, %c0_0, %c0_1] : memref<1x4x16xf32, #tpu.memory_space<vmem>>, vector<1x4x16xf32>
    %1 = vector.shape_cast %0 : vector<1x4x16xf32> to vector<4x16xf32>
    %cst = arith.constant 0.000000e+00 : f32
    %2 = vector.broadcast %cst : f32 to vector<4x1xf32>
    %3 = vector.extract_strided_slice %1 {offsets = [0, 0], sizes = [4, 15], strides = [1, 1]} : vector<4x16xf32> to vector<4x15xf32>
    %cst_2 = arith.constant 0.000000e+00 : f32
    %4 = vector.broadcast %cst_2 : f32 to vector<4x112xf32>
    %5 = tpu.concatenate %2, %3, %4 in 1 : vector<4x1xf32>, vector<4x15xf32>, vector<4x112xf32> -> vector<4x128xf32>
    %cst_3 = arith.constant 0.000000e+00 : f32
    %6 = vector.broadcast %cst_3 : f32 to vector<4x128xf32>
    %7 = tpu.concatenate %5, %6 in 0 : vector<4x128xf32>, vector<4x128xf32> -> vector<8x128xf32>
    %c0_4 = arith.constant 0 : index
    %c0_5 = arith.constant 0 : index
    %8 = vector.load %arg5[%c0_4, %c0_5] : memref<24x128xf32, #tpu.memory_space<vmem>>, vector<8x128xf32>
    tpu.vector_store %arg5[%c0_4, %c0_5], %7 {strides = array<i32>} : memref<24x128xf32, #tpu.memory_space<vmem>>, vector<8x128xf32>,
    %cst_6 = arith.constant 0.000000e+00 : f32
    %9 = vector.broadcast %cst_6 : f32 to vector<4x112xf32>
    %10 = tpu.concatenate %1, %9 in 1 : vector<4x16xf32>, vector<4x112xf32> -> vector<4x128xf32>
    %cst_7 = arith.constant 0.000000e+00 : f32
    %11 = vector.broadcast %cst_7 : f32 to vector<4x128xf32>
    %12 = tpu.concatenate %10, %11 in 0 : vector<4x128xf32>, vector<4x128xf32> -> vector<8x128xf32>
    %c8 = arith.constant 8 : index
    %c0_8 = arith.constant 0 : index
    %13 = vector.load %arg5[%c8, %c0_8] : memref<24x128xf32, #tpu.memory_space<vmem>>, vector<8x128xf32>
    tpu.vector_store %arg5[%c8, %c0_8], %12 {strides = array<i32>} : memref<24x128xf32, #tpu.memory_space<vmem>>, vector<8x128xf32>,
    %14 = vector.extract_strided_slice %1 {offsets = [0, 1], sizes = [4, 15], strides = [1, 1]} : vector<4x16xf32> to vector<4x15xf32>
    %cst_9 = arith.constant 0.000000e+00 : f32
    %15 = vector.broadcast %cst_9 : f32 to vector<4x113xf32>
    %16 = tpu.concatenate %14, %15 in 1 : vector<4x15xf32>, vector<4x113xf32> -> vector<4x128xf32>
    %cst_10 = arith.constant 0.000000e+00 : f32
    %17 = vector.broadcast %cst_10 : f32 to vector<4x128xf32>
    %18 = tpu.concatenate %16, %17 in 0 : vector<4x128xf32>, vector<4x128xf32> -> vector<8x128xf32>
    %c16 = arith.constant 16 : index
    %c0_11 = arith.constant 0 : index
    %19 = vector.load %arg5[%c16, %c0_11] : memref<24x128xf32, #tpu.memory_space<vmem>>, vector<8x128xf32>
    tpu.vector_store %arg5[%c16, %c0_11], %18 {strides = array<i32>} : memref<24x128xf32, #tpu.memory_space<vmem>>, vector<8x128xf32>,
    %c0_12 = arith.constant 0 : index
    %c0_13 = arith.constant 0 : index
    %20 = vector.load %arg2[%c0_12, %c0_13] : memref<3x24xf32, #tpu.memory_space<vmem>>, vector<3x24xf32>
    %c0_14 = arith.constant 0 : index
    %c0_15 = arith.constant 0 : index
    %21 = vector.load %arg5[%c0_14, %c0_15] : memref<24x128xf32, #tpu.memory_space<vmem>>, vector<24x128xf32>
    %cst_16 = arith.constant dense<0.000000e+00> : vector<3x128xf32>
    %22 = tpu.matmul %20, %21, %cst_16 {dimension_numbers = #tpu.dot_dimension_numbers<[1], [0], [0], [1], [0, 0, 1, 1], [], []>} : vector<3x24xf32>, vector<24x128xf32>, vector<3x128xf32> -> vector<3x128xf32>
    %c0_17 = arith.constant 0 : index
    %c0_18 = arith.constant 0 : index
    %23 = vector.load %arg3[%c0_17, %c0_18] : memref<3x1xf32, #tpu.memory_space<vmem>>, vector<3x1xf32>
    %24 = vector.broadcast %23 : vector<3x1xf32> to vector<3x128xf32>
    %25 = arith.addf %22, %24 : vector<3x128xf32>
    %c0_19 = arith.constant 0 : index
    %c0_20 = arith.constant 0 : index
    %c0_21 = arith.constant 0 : index
    %26 = vector.load %arg4[%c0_19, %c0_20, %c0_21] : memref<1x3x128xf32, #tpu.memory_space<vmem>>, vector<1x3x128xf32>
    %27 = vector.shape_cast %26 : vector<1x3x128xf32> to vector<3x128xf32>
    %28 = vector.shape_cast %25 : vector<3x128xf32> to vector<1x3x128xf32>
    tpu.vector_store %arg4[%c0_19, %c0_20, %c0_21], %28 {strides = array<i32>} : memref<1x3x128xf32, #tpu.memory_space<vmem>>, vector<1x3x128xf32>,
    return
  }
  func.func @transform_0(%arg0: i32) -> (i32, i32, i32) {
    %c0_i32 = arith.constant 0 : i32
    %c0_i32_0 = arith.constant 0 : i32
    %c0_i32_1 = arith.constant 0 : i32
    return %arg0, %c0_i32, %c0_i32_0 : i32, i32, i32
  }
  func.func @transform_1(%arg0: i32) -> (i32, i32) {
    %c0_i32 = arith.constant 0 : i32
    %c0_i32_0 = arith.constant 0 : i32
    %c0_i32_1 = arith.constant 0 : i32
    return %c0_i32, %c0_i32_0 : i32, i32
  }
  func.func @transform_2(%arg0: i32) -> (i32, i32) {
    %c0_i32 = arith.constant 0 : i32
    %c0_i32_0 = arith.constant 0 : i32
    %c0_i32_1 = arith.constant 0 : i32
    return %c0_i32, %c0_i32_0 : i32, i32
  }
  func.func @transform_3(%arg0: i32) -> (i32, i32, i32) {
    %c0_i32 = arith.constant 0 : i32
    %c0_i32_0 = arith.constant 0 : i32
    %c0_i32_1 = arith.constant 0 : i32
    return %arg0, %c0_i32, %c0_i32_0 : i32, i32, i32
  }
}

</mosaic_0001>

<bundles_post_ra>
// kernel: tpu_custom_call.1
= control target key start
LH: loop header
LB: loop body
LE: loop exit
PB: predicated region body
PF: predicated region fallthrough
CT: control target
= control target key end

     0   :  { %8 = vsyncpa [#allocation4], 0  ;;  %s642_s0 = inlined_call_operand.hbm [shape: f32[2,4,16], index: 0, kind: input, shape index: {}]   ;;  %s643_s1 = inlined_call_operand.vmem [shape: f32[3,24], index: 1, kind: input, shape index: {}]   ;;  %s644_s2 = inlined_call_operand.vmem [shape: f32[3,1], index: 2, kind: input, shape index: {}]   ;;  %s645_s3 = inlined_call_operand.vmem [shape: f32[2,3,128], index: 3, kind: output, shape index: {}]  }
   0x1   :  { %10 = vsyncpa [#allocation4 + $0x1], 0  ;;  %s529_s12 = smov 0   ;;  %s531_s13 = smov 0  }
   0x2   :  { %s533_s14 = smov 0   ;;  %s535_s15 = smov 0  }
   0x3 LB: > { %s548_s16 = sadd.s32 4294967295, %s500_s15   ;;  %s551_s17 = sadd.s32 1, %s500_s15   ;;  %s500_s15 = sphi %s535_s15, %s653_s15   ;;  %s496_s14 = sphi %s533_s14, %s652_s14   ;;  %s492_s13 = sphi %s531_s13, %s651_s13   ;;  %s488_s12 = sphi %s529_s12, %s650_s12  }
   0x4   : > { %s20_s18 = ssub.s32 %s500_s15, %s551_s17  ;;  %s23_s19 = sadd.s32 1, %s496_s14 }
   0x5   : > { %p21_p0 = scmp.eq.s32.totalorder %s20_s18, 0  ;;  %p30_p1 = scmp.ne.s32.totalorder %s496_s14, %s492_s13 }
   0x6   : > { %p31_p2 = scmp.eq.s32.totalorder %s500_s15, 0  ;;  %p36_p3 = scmp.ne.s32.totalorder %s492_s13, %s488_s12 }
   0x7   : > { %s561_s20 = scalar_select %p21_p0, %s496_s14, %s23_s19  }
   0x8   : > { %p32_p4 = por %p31_p2, %p30_p1  ;;  %p37_p5 = scmp.eq.s32.totalorder %s548_s16, 0 }
   0x9   : > { %p395_p6 = scmp.lt.s32.totalorder %s500_s15, 2  ;;  %s134_s22 = sand.u32 1, %s496_s14  }
   0xa   : > { %p565_p7 = por %p37_p5, %p36_p3  ;;  %s361_s23 = sshll.u32 %s134_s22, 2 }
   0xb   : > { %s362_s24 = sshll.u32 %s500_s15, 6  ;;  %s138_s28 = scalar_lea.vmem [#allocation3], %s361_s23 }
   0xc   : > { %s574_s27 = scalar_lea.hbm %s642_s0, %s362_s24  ;;  %s145_s29 = sshll.u32 %s138_s28, 4  ;;  %s576_s29 = int_to_ptr.vmem [resolvable:$true] %s145_s29 }
   0xd   : > { %p578_p8 = pnand %p395_p6, %p32_p4  ;;  %s135_s4 = scalar_lea.sflag [#allocation4], %s134_s22 }
   0xe   : > { %s436_s5 = scalar_lea.hbm %s574_s27, 64  ;;  %s441_s8 = scalar_lea.hbm %s642_s0, 128 }
   0xf   : > { %p437_p11 = scmp.ne.s32.totalorder %s574_s27, %s436_s5  ;;  %p438_p12 = pneg %p578_p8 }
  0x10   : > { %p442_p1 = scmp.lt.u32.totalorder %s574_s27, %s642_s0  ;;  %p443_p2 = scmp.lt.u32.totalorder %s441_s8, %s436_s5 }
  0x11   : > { %p439_p13 = pnand %p438_p12, %p437_p11  ;;  %p445_p4 = scmp.lt.u32.totalorder %s436_s5, %s574_s27 }
  0x12   : > { %p444_p3 = por %p443_p2, %p442_p1 }
  0x13   : > { %p440_p0 = pneg %p439_p13 }
  0x14   : > { %p446_p5 = por %p445_p4, %p444_p3 }
  0x16   : > { %p447_p6 = pnand %p446_p5, %p440_p0 }
  0x18   : > { %450 = shalt.err (!%p447_p6)
}
  0x19   : > { %s451_s11 = scalar_lea.vmem %s576_s29, 64  ;;  %s502_s12 = smov [#allocation3]  }
  0x1a   : > { %p452_p11 = scmp.ne.s32.totalorder %s576_s29, %s451_s11  ;;  %s456_s18 = sshll.u32 %s502_s12, 4  ;;  %s457_s18 = int_to_ptr.vmem [resolvable:$false] %s456_s18 }
  0x1b   : > { %s458_s19 = scalar_lea.vmem %s457_s18, 128  ;;  %p459_p10 = scmp.lt.s32.totalorder %s576_s29, %s457_s18 }
  0x1c   : > { %p454_p13 = pnand %p452_p11, %p438_p12  ;;  %p460_p1 = scmp.lt.s32.totalorder %s458_s19, %s451_s11 }
  0x1e   : > { %p455_p9 = pneg %p454_p13  ;;  %p461_p2 = por %p460_p1, %p459_p10 }
  0x20   : > { %p462_p3 = pnand %p461_p2, %p455_p9 }
  0x22   : > { %465 = shalt.err (!%p462_p3)
}
  0x23   : > { %394 = dma.hbm_to_vmem [thread:$0]  (!%p578_p8), %s574_s27, 64, %s576_s29, %s135_s4  }
  0x24   : > { %p648_p0 = scmp.lt.s32.totalorder %s500_s15, 3  ;;  %p649_p4 = scmp.ge.s32.totalorder %s500_s15, 1 }
  0x26   : > { %p151_p12 = pnand %p649_p4, %p648_p0 }
  0x27   : > { %s156_s22 = sand.u32 (!%p151_p12), 1, %s492_s13  }
  0x28   : > { %154 = sbr.rel (%p151_p12) target bundleno = 390 (0x186), region = 32  ;;  %s364_s23 = sshll.u32 (!%p151_p12), %s156_s22, 2 }
  0x29   : > { %s157_s24 = scalar_lea.sflag (!%p151_p12), [#allocation4], %s156_s22  ;;  %s160_s25 = scalar_lea.vmem (!%p151_p12), [#allocation3], %s364_s23 }
  0x2f   : > { %483 = dma.done.wait (%p565_p7), %s157_s24, 64  }
  0x30   : > { %485 = vsyncadd (%p565_p7), %s157_s24, 4294967232  ;;  %v503_v0 = vmov 0.0|0.0   ;;  %vm504_vm0 = vmmov 0   ;;  %v505_v1 = vmov 0.0   ;;  %v506_v2 = vmov 0   ;;  %s507_s27 = smov 1  }
  0x31   : > { %385 = vmatprep.subr.bf16.mxu0 %v503_v0  ;;  %382 = vmatprep.mubr.msk.f32.mxu0 %vm504_vm0, %v505_v1  ;;  %v186_v3 = vld [vmem:[%s160_s25] sm:$0xf]  ;;  %s508_s28 = smov 127   ;;  %vm193_vm1 = vcmask 130048   ;;  %vm191_vm2 = vcmask 7168   ;;  %vm195_vm3 = vcmask 1043456  }
  0x32   : > { %434 = vset.pattern.permute.xlu1 %v506_v2  ;;  %435 = vset.pattern.permute.xlu0 %v506_v2  ;;  %v212_v4 = vld [vmem:[%s644_s2] sm:$0x7]  ;;  %v198_v6 = vsel %vm193_vm1, %v186_v3, 0.0  ;;  %vm387_vm4 = vmpackc.low %vm195_vm3, %vm195_vm3  ;;  %vm204_vm5 = vcmask 121856   ;;  %vm218_vm6 = vcmask 195584   ;;  %p182_p7 = scmp.lt.s32.totalorder %s548_s16, 1 }
  0x33   : > { %188 = vrot.lane.b32.xlu0 %v186_v3, %s507_s27  ;;  %215 = vperm.xlu1 %434, %v212_v4   ;;  %v208_v12 = vld [vmem:[%s643_s1] sm:$0x7] }
  0x34   : > { %s655_s16 = smov (!%p182_p7, %s548_s16), 1 }
  0x35   : > { %s365_s30 = sshll.u32 %s655_s16, 2 }
  0x36   : > { %s185_s6 = scalar_lea.vmem %s645_s3, %s365_s30 }
  0x37   : > { %201 = vrot.lane.b32.xlu0 %v186_v3, %s508_s28 }
  0xa5   : > { %v189_v5 = vpop.permute.xlu0 %188 }
  0xa6   : > { %v192_v7 = vsel %vm191_vm2, 0.0, %v189_v5 }
  0xa7   : > { %v194_v8 = vsel %vm193_vm1, %v192_v7, 0.0 }
  0xa8   : > { %v386_v9 = vpack.c.bf16 %v198_v6, %v194_v8 }
  0xa9   : > { %v202_v10 = vpop.permute.xlu0 %201 }
  0xaa   : > { %388 = vmatpush3.bf16.msk.msra.mxu0 %vm387_vm4, %v386_v9  ;;  %v205_v11 = vsel %vm204_vm5, %v202_v10, 0.0 }
  0xab   : > { %380 = vmatprep.subr.mxu0 %v505_v1 }
  0xae   : > { %381 = vmatpush3.msk.msra.mxu0 %vm195_vm3, %v205_v11 }
  0xaf   : > { %383 = vmatmul.mubr.msk.f32.vlgmr.msra.gmra.mrb[0].mxu0 %vm218_vm6, %v208_v12 }
  0xb2   : > { %v216_v13 = vpop.permute.xlu1 %215 }
 0x182   : > { %v288_v14 = vpop.f32.mrb[0].mxu0 }
 0x183   : > { %v289_v15 = vadd.f32 %v288_v14, %v216_v13  ;;  %v384_v16 = vpop.f32.mrb[1].mxu0 }
 0x185   : > { %292 = vst [vmem:[%s185_s6] sm:$0x7] %v289_v15 }
 0x186 PF: > { %p13_p8 = scmp.ge.s32.totalorder %s551_s17, 4   ;;  %s650_s12 = smov %s492_s13 }
 0x187   : > { %s651_s13 = smov %s496_s14  ;;  %s652_s14 = smov %s561_s20 }
 0x188   : > { %s653_s15 = smov %s551_s17  ;;  %15 = sbr.rel (!%p13_p8) target bundleno = 3 (0x3), region = 72 }
 0x18f   :  { %312 = vsyncpa [#allocation4], 1 }
 0x190   :  { %314 = vsyncpa [#allocation4 + $0x1], 1 }

</bundles_post_ra>
